<compile_context>
chip_gen: v6e
topology: v6e:2x2x1
jax: 0.10.0
libtpu: 0.0.40
codegen_flags: <defaults>
</compile_context>

<pallas_src>
import functools

import jax
import jax.numpy as jnp
from jax import lax
from jax.experimental import pallas as pl
from jax.experimental.pallas import tpu as pltpu

_LANES = 128


def _sce_loss_kernel(x_ref, t_ref, o_ref, acc_ref, *,
                     tile_rows, lanes, total, full_tiles, rows_true):
    """Processes one (tile_rows, lanes) tile of the streaming reduction."""
    c = pl.program_id(0)                      # core-split index ("parallel")
    i = pl.program_id(1)                      # tile index within the split
    n_inner = pl.num_programs(1)
    g = c * n_inner + i                       # logical global tile index

    # Zero this split's vector accumulator on its first tile.
    @pl.when(i == 0)
    def _():
        acc_ref[...] = jnp.zeros_like(acc_ref)

    # Cast in VMEM; inputs stream in their native (possibly narrow) dtype.
    x = x_ref[...].astype(jnp.float32)
    t = t_ref[...].astype(jnp.float32)

    # -x*target + max(x, 0) + log(1 + exp(-|x|));  log argument is in [1, 2].
    # TODO(synk): on v7x, if a bundle dump shows the single EUP slot
    # saturated, compute exp/log in bf16 (bf16 EUP exists on v6e/v7x) while
    # keeping the f32 accumulate.
    val = -x * t + jnp.maximum(x, 0.0) + jnp.log(1.0 + jnp.exp(-jnp.abs(x)))

    # Tiles whose element range lies fully below `total` need no mask
    # (steady state).  Only the ragged last real tile and any redundant
    # (clamped) tiles of the core split take the masked path.
    needs_mask = g >= full_tiles

    @pl.when(g < full_tiles)
    def _():
        acc_ref[...] += jnp.sum(val, axis=0, keepdims=True)

    @pl.when(needs_mask)
    def _():
        row = lax.broadcasted_iota(jnp.int32, (tile_rows, lanes), 0)
        if total % lanes == 0:
            # Lane dimension is exact -> cheaper row-only mask.
            grow = g * tile_rows + row
            masked = jnp.where(grow < rows_true, val, 0.0)
        else:
            lane = lax.broadcasted_iota(jnp.int32, (tile_rows, lanes), 1)
            idx = g * (tile_rows * lanes) + row * lanes + lane
            masked = jnp.where(idx < total, val, 0.0)
        acc_ref[...] += jnp.sum(masked, axis=0, keepdims=True)

    # Write this split's lane-dense partial sum; the cross-lane/cross-split
    # reduce, mean and abs happen once in the wrapper (tiny epilogue).
    @pl.when(i == n_inner - 1)
    def _():
        o_ref[...] = acc_ref[...].reshape(1, 1, lanes)


def sigmoid_cross_entropy_loss(x, target, *, tile_rows=None, n_split=2):
    """Pallas implementation of SigmoidCrossEntropyLoss.forward(x, target)."""
    assert x.shape == target.shape
    if target.dtype == jnp.bool_:
        target = target.astype(jnp.int8)      # bools pack awkwardly in VMEM

    lanes = _LANES
    total = int(x.size)
    rows = pl.cdiv(total, lanes)
    pad = rows * lanes - total                # < 128 elements

    x_item = jnp.dtype(x.dtype).itemsize
    t_item = jnp.dtype(target.dtype).itemsize

    if tile_rows is None:
        # Target ~16 MiB of double-buffered input VMEM across both streams
        # (f32+f32 -> 8192 rows; narrower target dtypes get taller tiles).
        tile_rows = (16 << 20) // (2 * lanes * (x_item + t_item))
    tile_rows = int(tile_rows)
    tile_rows = max(8, min(tile_rows, pl.cdiv(rows, 8) * 8))
    tile_rows = (tile_rows // 8) * 8          # keep sublane (8) alignment

    tiles_total = pl.cdiv(rows, tile_rows)
    n_split = max(1, min(int(n_split), tiles_total))
    tiles_per_split = pl.cdiv(tiles_total, n_split)

    def _to_slab(a):
        flat = jnp.ravel(a)                   # native dtype stays in HBM
        if pad:
            # TODO(synk): this tail pad (<128 elems) still costs one extra
            # HBM read+write pass over the input; splitting off the small
            # tail chunk would avoid it entirely.
            flat = jnp.pad(flat, (0, pad))
        return flat.reshape(rows, lanes)

    x2 = _to_slab(x)
    t2 = _to_slab(target)

    tile_elems = tile_rows * lanes
    full_tiles = total // tile_elems          # tiles that need no masking

    def in_map(c, i):
        g = c * tiles_per_split + i
        # Redundant tiles (only when tiles_total % n_split != 0) are clamped
        # onto the last real block; their contribution is zeroed by the mask.
        return (jnp.minimum(g, tiles_total - 1), 0)

    kernel = functools.partial(
        _sce_loss_kernel, tile_rows=tile_rows, lanes=lanes, total=total,
        full_tiles=full_tiles, rows_true=total // lanes)

    # VMEM accounting: 2 pipeline buffers per input stream (+ headroom).
    dbuf_bytes = 2 * tile_rows * lanes * (x_item + t_item)
    vmem_limit = int(min(48 << 20, max(32 << 20, dbuf_bytes + (4 << 20))))

    partials = pl.pallas_call(
        kernel,
        out_shape=jax.ShapeDtypeStruct((n_split, 1, lanes), jnp.float32),
        grid_spec=pltpu.PrefetchScalarGridSpec(
            num_scalar_prefetch=0,
            grid=(n_split, tiles_per_split),
            in_specs=[
                pl.BlockSpec((tile_rows, lanes), in_map),
                pl.BlockSpec((tile_rows, lanes), in_map),
            ],
            out_specs=pl.BlockSpec((1, 1, lanes), lambda c, i: (c, 0, 0)),
            scratch_shapes=[pltpu.VMEM((1, lanes), jnp.float32)],
        ),
        compiler_params=pltpu.CompilerParams(
            dimension_semantics=("parallel", "arbitrary"),
            vmem_limit_bytes=vmem_limit,
        ),
    )(x2, t2)

    # Tiny epilogue: cross-lane + cross-split reduce, mean, abs.
    # NOTE: the f32 running sum loses low-order bits for very large inputs
    # (~1e8+ elements); switch to pairwise per-tile partials if that matters.
    return jnp.abs(jnp.sum(partials) / jnp.float32(total))


def _reference(x, target):
    tmp = 1.0 + jnp.exp(-jnp.abs(x))
    return jnp.abs(
        jnp.mean(-x * target + jnp.maximum(x, 0.0) + jnp.log(tmp)))


if __name__ == "__main__":
    key = jax.random.PRNGKey(0)
    kx, kt = jax.random.split(key)
    # Small NCHW shapes consistent with a conv-style logits map.
    x = jax.random.normal(kx, (2, 4, 16, 16), dtype=jnp.float32)
    target = (jax.random.uniform(kt, (2, 4, 16, 16)) > 0.5).astype(jnp.float32)

    loss = sigmoid_cross_entropy_loss(x, target)
    jax.block_until_ready(loss)
    ref = _reference(x, target)
    assert jnp.allclose(loss, ref, atol=1e-5, rtol=1e-5), (loss, ref)

    # Also exercise the ragged-tail / multi-tile / dual-split / masked paths
    # with a small non-128-aligned shape and a deliberately tiny tile.
    kx2, kt2 = jax.random.split(jax.random.PRNGKey(1))
    x2 = jax.random.normal(kx2, (3, 5, 33, 17), dtype=jnp.float32)
    t2 = (jax.random.uniform(kt2, (3, 5, 33, 17)) > 0.5).astype(jnp.float32)
    loss2 = sigmoid_cross_entropy_loss(x2, t2, tile_rows=8, n_split=2)
    jax.block_until_ready(loss2)
    ref2 = _reference(x2, t2)
    assert jnp.allclose(loss2, ref2, atol=1e-5, rtol=1e-5), (loss2, ref2)

    print("KERNEL_OK")
</pallas_src>

<mosaic_0001>
module attributes {stable_mosaic.version = 11 : i64} {
  func.func @_sce_loss_kernel(%arg0: i32, %arg1: i32, %arg2: memref<16x128xf32, #tpu.memory_space<vmem>>, %arg3: memref<16x128xf32, #tpu.memory_space<vmem>>, %arg4: memref<1x1x128xf32, #tpu.memory_space<vmem>>, %arg5: memref<1x128xf32, #tpu.memory_space<vmem>>) attributes {dimension_semantics = [#tpu.dimension_semantics<parallel>, #tpu.dimension_semantics<arbitrary>], iteration_bounds = array<i64: 1, 1>, scalar_prefetch = 0 : i64, scratch_operands = 1 : i64, tpu.core_type = #tpu.core_type<tc>, window_params = [{transform_indices = @transform_0, window_bounds = array<i64: 16, 128>}, {transform_indices = @transform_1, window_bounds = array<i64: 16, 128>}, {transform_indices = @transform_2, window_bounds = array<i64: 1, 1, 128>}]} {
    %c1_i32 = arith.constant 1 : i32
    %0 = arith.muli %arg0, %c1_i32 : i32
    %1 = arith.addi %0, %arg1 : i32
    %c0_i32 = arith.constant 0 : i32
    %2 = arith.cmpi eq, %arg1, %c0_i32 : i32
    %3 = arith.extui %2 : i1 to i32
    %c0_i32_0 = arith.constant 0 : i32
    %4 = arith.cmpi ne, %3, %c0_i32_0 : i32
    scf.if %4 {
      %cst_13 = arith.constant 0.000000e+00 : f32
      %30 = vector.broadcast %cst_13 : f32 to vector<1x128xf32>
      %c0_14 = arith.constant 0 : index
      %c0_15 = arith.constant 0 : index
      %31 = vector.load %arg5[%c0_14, %c0_15] : memref<1x128xf32, #tpu.memory_space<vmem>>, vector<1x128xf32>
      tpu.vector_store %arg5[%c0_14, %c0_15], %30 {strides = array<i32>} : memref<1x128xf32, #tpu.memory_space<vmem>>, vector<1x128xf32>,
    } else {
    }
    %c0 = arith.constant 0 : index
    %c0_1 = arith.constant 0 : index
    %5 = vector.load %arg2[%c0, %c0_1] : memref<16x128xf32, #tpu.memory_space<vmem>>, vector<16x128xf32>
    %c0_2 = arith.constant 0 : index
    %c0_3 = arith.constant 0 : index
    %6 = vector.load %arg3[%c0_2, %c0_3] : memref<16x128xf32, #tpu.memory_space<vmem>>, vector<16x128xf32>
    %cst = arith.constant 0.000000e+00 : f32
    %7 = vector.broadcast %cst : f32 to vector<16x128xf32>
    %8 = arith.subf %7, %5 : vector<16x128xf32>
    %9 = arith.mulf %8, %6 : vector<16x128xf32>
    %cst_4 = arith.constant 0.000000e+00 : f32
    %10 = vector.broadcast %cst_4 : f32 to vector<16x128xf32>
    %11 = arith.maximumf %5, %10 : vector<16x128xf32>
    %12 = arith.addf %9, %11 : vector<16x128xf32>
    %13 = math.absf %5 : vector<16x128xf32>
    %cst_5 = arith.constant 0.000000e+00 : f32
    %14 = vector.broadcast %cst_5 : f32 to vector<16x128xf32>
    %15 = arith.subf %14, %13 : vector<16x128xf32>
    %16 = math.exp %15 : vector<16x128xf32>
    %cst_6 = arith.constant 1.000000e+00 : f32
    %17 = vector.broadcast %cst_6 : f32 to vector<16x128xf32>
    %18 = arith.addf %17, %16 : vector<16x128xf32>
    %19 = math.log %18 : vector<16x128xf32>
    %20 = arith.addf %12, %19 : vector<16x128xf32>
    %c1_i32_7 = arith.constant 1 : i32
    %21 = arith.cmpi sge, %1, %c1_i32_7 : i32
    %c1_i32_8 = arith.constant 1 : i32
    %22 = arith.cmpi slt, %1, %c1_i32_8 : i32
    %23 = arith.extui %22 : i1 to i32
    %c0_i32_9 = arith.constant 0 : i32
    %24 = arith.cmpi ne, %23, %c0_i32_9 : i32
    scf.if %24 {
      %c0_13 = arith.constant 0 : index
      %c0_14 = arith.constant 0 : index
      %30 = vector.load %arg5[%c0_13, %c0_14] : memref<1x128xf32, #tpu.memory_space<vmem>>, vector<1x128xf32>
      %cst_15 = arith.constant dense<0.000000e+00> : vector<128xf32>
      %31 = vector.multi_reduction <add>, %20, %cst_15 [0] : vector<16x128xf32> to vector<128xf32>
      %32 = vector.shape_cast %31 : vector<128xf32> to vector<1x128xf32>
      %33 = arith.addf %30, %32 : vector<1x128xf32>
      %c0_16 = arith.constant 0 : index
      %c0_17 = arith.constant 0 : index
      %34 = vector.load %arg5[%c0_16, %c0_17] : memref<1x128xf32, #tpu.memory_space<vmem>>, vector<1x128xf32>
      tpu.vector_store %arg5[%c0_16, %c0_17], %33 {strides = array<i32>} : memref<1x128xf32, #tpu.memory_space<vmem>>, vector<1x128xf32>,
    } else {
    }
    %25 = arith.extui %21 : i1 to i32
    %c0_i32_10 = arith.constant 0 : i32
    %26 = arith.cmpi ne, %25, %c0_i32_10 : i32
    scf.if %26 {
      %30 = tpu.iota {dimensions = array<i32: 0>} : vector<16x128xi32>
      %c16_i32 = arith.constant 16 : i32
      %31 = arith.muli %1, %c16_i32 : i32
      %32 = vector.broadcast %31 : i32 to vector<16x128xi32>
      %33 = arith.addi %32, %30 : vector<16x128xi32>
      %c16_i32_13 = arith.constant 16 : i32
      %34 = vector.broadcast %c16_i32_13 : i32 to vector<16x128xi32>
      %35 = arith.cmpi slt, %33, %34 : vector<16x128xi32>
      %cst_14 = arith.constant 0.000000e+00 : f32
      %36 = vector.broadcast %cst_14 : f32 to vector<16x128xf32>
      %37 = arith.select %35, %20, %36 : vector<16x128xi1>, vector<16x128xf32>
      %c0_15 = arith.constant 0 : index
      %c0_16 = arith.constant 0 : index
      %38 = vector.load %arg5[%c0_15, %c0_16] : memref<1x128xf32, #tpu.memory_space<vmem>>, vector<1x128xf32>
      %cst_17 = arith.constant dense<0.000000e+00> : vector<128xf32>
      %39 = vector.multi_reduction <add>, %37, %cst_17 [0] : vector<16x128xf32> to vector<128xf32>
      %40 = vector.shape_cast %39 : vector<128xf32> to vector<1x128xf32>
      %41 = arith.addf %38, %40 : vector<1x128xf32>
      %c0_18 = arith.constant 0 : index
      %c0_19 = arith.constant 0 : index
      %42 = vector.load %arg5[%c0_18, %c0_19] : memref<1x128xf32, #tpu.memory_space<vmem>>, vector<1x128xf32>
      tpu.vector_store %arg5[%c0_18, %c0_19], %41 {strides = array<i32>} : memref<1x128xf32, #tpu.memory_space<vmem>>, vector<1x128xf32>,
    } else {
    }
    %c0_i32_11 = arith.constant 0 : i32
    %27 = arith.cmpi eq, %arg1, %c0_i32_11 : i32
    %28 = arith.extui %27 : i1 to i32
    %c0_i32_12 = arith.constant 0 : i32
    %29 = arith.cmpi ne, %28, %c0_i32_12 : i32
    scf.if %29 {
      %c0_13 = arith.constant 0 : index
      %c0_14 = arith.constant 0 : index
      %30 = vector.load %arg5[%c0_13, %c0_14] : memref<1x128xf32, #tpu.memory_space<vmem>>, vector<1x128xf32>
      %31 = vector.shape_cast %30 : vector<1x128xf32> to vector<1x1x128xf32>
      %c0_15 = arith.constant 0 : index
      %c0_16 = arith.constant 0 : index
      %c0_17 = arith.constant 0 : index
      %32 = vector.load %arg4[%c0_15, %c0_16, %c0_17] : memref<1x1x128xf32, #tpu.memory_space<vmem>>, vector<1x1x128xf32>
      tpu.vector_store %arg4[%c0_15, %c0_16, %c0_17], %31 {strides = array<i32>} : memref<1x1x128xf32, #tpu.memory_space<vmem>>, vector<1x1x128xf32>,
    } else {
    }
    return
  }
  func.func @transform_0(%arg0: i32, %arg1: i32) -> (i32, i32) {
    %c1_i32 = arith.constant 1 : i32
    %0 = arith.muli %arg0, %c1_i32 : i32
    %1 = arith.addi %0, %arg1 : i32
    %c0_i32 = arith.constant 0 : i32
    %2 = arith.minsi %1, %c0_i32 : i32
    %c0_i32_0 = arith.constant 0 : i32
    %c0_i32_1 = arith.constant 0 : i32
    return %2, %c0_i32_0 : i32, i32
  }
  func.func @transform_1(%arg0: i32, %arg1: i32) -> (i32, i32) {
    %c1_i32 = arith.constant 1 : i32
    %0 = arith.muli %arg0, %c1_i32 : i32
    %1 = arith.addi %0, %arg1 : i32
    %c0_i32 = arith.constant 0 : i32
    %2 = arith.minsi %1, %c0_i32 : i32
    %c0_i32_0 = arith.constant 0 : i32
    %c0_i32_1 = arith.constant 0 : i32
    return %2, %c0_i32_0 : i32, i32
  }
  func.func @transform_2(%arg0: i32, %arg1: i32) -> (i32, i32, i32) {
    %c0_i32 = arith.constant 0 : i32
    %c0_i32_0 = arith.constant 0 : i32
    %c0_i32_1 = arith.constant 0 : i32
    return %arg0, %c0_i32, %c0_i32_0 : i32, i32, i32
  }
}

</mosaic_0001>

<bundles_post_ra>
// kernel: tpu_custom_call.1
= control target key start
LH: loop header
LB: loop body
LE: loop exit
PB: predicated region body
PF: predicated region fallthrough
CT: control target
= control target key end

     0   :  { %7 = vsyncpa [#allocation4], 0  ;;  %s268_s0 = inlined_call_operand.hbm [shape: f32[16,128], index: 0, kind: input, shape index: {}]   ;;  %s269_s1 = inlined_call_operand.hbm [shape: f32[16,128], index: 1, kind: input, shape index: {}]   ;;  %s270_s2 = inlined_call_operand.hbm [shape: f32[1,1,128], index: 2, kind: output, shape index: {}]  }
   0x1   :  { %8 = vsyncpa [#allocation7], 0 }
   0x2   :  { %9 = vsyncpa [#allocation5], 0  ;;  %s238_s9 = smov [#allocation3]  }
   0x3   :  { %s21_s10 = sshll.u32 %s238_s9, 4  ;;  %s22_s10 = int_to_ptr.vmem [resolvable:$true] %s21_s10 }
   0x4   :  { %s180_s11 = scalar_lea.vmem %s22_s10, 256  ;;  %p185_p1 = scmp.lt.s32.totalorder %s22_s10, %s22_s10 }
   0x5   :  { %p181_p0 = scmp.ne.s32.totalorder %s22_s10, %s180_s11  ;;  %p186_p2 = scmp.lt.s32.totalorder %s180_s11, %s180_s11 }
   0x7   :  { %p187_p3 = por %p186_p2, %p185_p1 }
   0x9   :  { %p188_p4 = pnand %p187_p3, %p181_p0 }
   0xb   :  { %191 = shalt.err (!%p188_p4)
}
   0xc   :  { %s239_s12 = smov 128   ;;  %s240_s13 = smov 8  }
   0xd   :  { %27 = dma.hbm_to_vmem [thread:$0]  %s268_s0, 256, %s22_s10, [#allocation4], %s239_s12, %s239_s12, %s240_s13  }
   0xe   :  { %s241_s16 = smov [#allocation6]  }
   0xf   :  { %s39_s17 = sshll.u32 %s241_s16, 4  ;;  %s40_s17 = int_to_ptr.vmem [resolvable:$true] %s39_s17 }
  0x10   :  { %s200_s18 = scalar_lea.vmem %s40_s17, 256  ;;  %p205_p6 = scmp.lt.s32.totalorder %s40_s17, %s40_s17 }
  0x11   :  { %p201_p5 = scmp.ne.s32.totalorder %s40_s17, %s200_s18  ;;  %p206_p7 = scmp.lt.s32.totalorder %s200_s18, %s200_s18 }
  0x13   :  { %p207_p8 = por %p206_p7, %p205_p6 }
  0x15   :  { %p208_p9 = pnand %p207_p8, %p201_p5 }
  0x17   :  { %211 = shalt.err (!%p208_p9)
}
  0x18   :  { %45 = dma.hbm_to_vmem [thread:$0]  %s269_s1, 256, %s40_s17, [#allocation7], %s239_s12, %s239_s12, %s240_s13  }
  0x19   :  { %232 = dma.done.wait [#allocation4], 256  }
  0x1a   :  { %233 = vsyncadd [#allocation4], 4294967040 }
  0x1b   :  { %234 = dma.done.wait [#allocation7], 256  }
  0x1c   :  { %235 = vsyncadd [#allocation7], 4294967040  ;;  %v242_v0 = vmov 0.0   ;;  %v66_v1 = vld [vmem:[#allocation3] sm:$0xff]  ;;  %v67_v2 = vld [vmem:[#allocation3 + $0x8] sm:$0xff]  ;;  %s243_s0 = smov [#allocation8]  }
  0x1d   :  { %65 = vst [vmem:[#allocation2] sm:$0x1] %v242_v0  ;;  %v78_v3 = vand.u32 2147483647, %v66_v1  ;;  %v79_v4 = vand.u32 2147483647, %v67_v2 }
  0x1e   :  { %v70_v13 = vsub.f32 0.0, %v66_v1  ;;  %v68_v14 = vld [vmem:[#allocation6] sm:$0xff]  ;;  %v71_v15 = vsub.f32 0.0, %v67_v2  ;;  %v69_v16 = vld [vmem:[#allocation6 + $0x8] sm:$0xff]  ;;  %v74_v18 = vmax.f32 %v66_v1, 0.0  ;;  %v75_v20 = vmax.f32 %v67_v2, 0.0 }
  0x1f   :  { %v80_v5 = vsub.f32 0.0, %v78_v3  ;;  %v81_v6 = vsub.f32 0.0, %v79_v4  ;;  %s144_s1 = sshll.u32 %s243_s0, 4  ;;  %s145_s1 = int_to_ptr.vmem [resolvable:$true] %s144_s1 }
  0x20   :  { %v72_v17 = vmul.f32 %v70_v13, %v68_v14  ;;  %v73_v19 = vmul.f32 %v71_v15, %v69_v16  ;;  %s212_s21 = scalar_lea.vmem %s145_s1, 16  ;;  %s216_s22 = scalar_lea.vmem %s145_s1, 32 }
  0x21   :  { %v82_v7 = vmul.f32 1.442695, %v80_v5  ;;  %v84_v8 = vmul.f32 1.442695, %v81_v6  ;;  %p213_p10 = scmp.ne.s32.totalorder %s145_s1, %s212_s21  ;;  %p217_p11 = scmp.lt.s32.totalorder %s145_s1, %s145_s1 }
  0x22   :  { %v76_v21 = vadd.f32 %v74_v18, %v72_v17  ;;  %v77_v23 = vadd.f32 %v75_v20, %v73_v19  ;;  %p218_p12 = scmp.lt.s32.totalorder %s216_s22, %s212_s21 }
  0x23   :  { %164 = vpow2.f32 %v82_v7 }
  0x24   :  { %166 = vpow2.f32 %v84_v8  ;;  %v99_v35 = vld [vmem:[#allocation2] sm:$0x1]  ;;  %p219_p13 = por %p218_p12, %p217_p11 }
  0x26   :  { %p220_p0 = pnand %p219_p13, %p213_p10 }
  0x30   :  { %v165_v9 = vpop.eup %164 }
  0x31   :  { %v167_v10 = vpop.eup %166  ;;  %v86_v11 = vadd.f32 1.0, %v165_v9 }
  0x32   :  { %v87_v12 = vadd.f32 1.0, %v167_v10 }
  0x33   :  { %168 = vlog2.f32 %v86_v11 }
  0x34   :  { %170 = vlog2.f32 %v87_v12 }
  0x40   :  { %v169_v22 = vpop.eup %168 }
  0x41   :  { %v171_v24 = vpop.eup %170  ;;  %v89_v25 = vmul.f32 0.6931472, %v169_v22 }
  0x42   :  { %v91_v26 = vmul.f32 0.6931472, %v171_v24 }
  0x43   :  { %v92_v27 = vadd.f32 %v89_v25, %v76_v21 }
  0x44   :  { %v93_v28 = vadd.f32 %v91_v26, %v77_v23 }
  0x46   :  { %v100_v29 = vadd.f32 %v93_v28, %v92_v27 }
  0x48   :  { %v101_v30 = vrot.slane %v100_v29, 4 }
  0x4a   :  { %v102_v31 = vadd.f32 %v101_v30, %v100_v29 }
  0x4c   :  { %v103_v32 = vrot.slane %v102_v31, 2 }
  0x4e   :  { %v104_v33 = vadd.f32 %v103_v32, %v102_v31 }
  0x50   :  { %v105_v34 = vrot.slane %v104_v33, 1 }
  0x52   :  { %v106_v36 = vadd.f32 %v105_v34, %v104_v33 }
  0x54   :  { %v107_v37 = vadd.f32 %v106_v36, %v99_v35 }
  0x56   :  { %108 = vst [vmem:[#allocation2] sm:$0x1] %v107_v37 }
  0x5d   :  { %v136_v38 = vld [vmem:[#allocation2] sm:$0x1] }
  0x5e   :  { %137 = vst [vmem:[#allocation8] sm:$0x1] %v136_v38 }
  0x5f   :  { %223 = shalt.err (!%p220_p0)
}
  0x60   :  { %147 = dma.vmem_to_hbm [thread:$0]  %s145_s1, 16, %s270_s2, [#allocation5]  }
  0x61   :  { %236 = dma.done.wait [#allocation5], 16  }
  0x62   :  { %237 = vsyncadd [#allocation5], 4294967280 }
  0x63   :  { %151 = vsyncpa [#allocation4], 1 }
  0x64   :  { %152 = vsyncpa [#allocation7], 1 }
  0x65   :  { %153 = vsyncpa [#allocation5], 1 }

</bundles_post_ra>
